<compile_context>
chip_gen: v6e
topology: v6e:2x2x1
jax: 0.10.0
libtpu: 0.0.40
codegen_flags: <defaults>
</compile_context>

<pallas_src>
from functools import partial

import jax
import jax.numpy as jnp
from jax import lax
from jax.experimental import pallas as pl
from jax.experimental.pallas import tpu as pltpu

IN = 4        # input features
HID = 10      # hidden units
OUT = 3       # output units
LANE = 128    # f32 vreg lane width
HID_PAD = LANE  # hidden padded to one lane group (natural MXU contraction)
OUT_PAD = 8     # dot-output lanes (>= OUT); only the first OUT are stored

SINGLE_BLOCK_MAX = 512  # below this: one un-gridded invocation (no pipeline)


def mlp_kernel(x_ref, w1_ref, b1_ref, w2_ref, b2_ref, o_ref):
    """Fused Linear(4,10)+Sigmoid+Linear(10,3)+Sigmoid on one (Bt, .) tile.

    x_ref : (Bt, 4)     f32 input rows
    w1_ref: (4, 128)    hidden dim zero-padded 10 -> 128 lanes
    b1_ref: (1, 128)    zero-padded bias
    w2_ref: (128, 8)    rows >= 10 zero (kills sigmoid(0)=0.5 padded lanes),
                        cols >= 3 zero
    b2_ref: (1, 8)      zero-padded bias
    o_ref : (Bt, 3)     compact output block (no wrapper slice needed)
    """
    x = x_ref[...]

    # Layer 1 on the MXU; HIGHEST keeps f32-accurate accumulation (needed to
    # match the f32 reference to 1e-5 -- default precision would use bf16).
    h = jnp.dot(x, w1_ref[...],
                preferred_element_type=jnp.float32,
                precision=lax.Precision.HIGHEST) + b1_ref[...]
    h = jax.nn.sigmoid(h)                               # (Bt, 128); pads -> 0.5

    # Layer 2 on the MXU; padded 0.5 lanes of h hit zero rows of w2 -> 0.
    y = jnp.dot(h, w2_ref[...],
                preferred_element_type=jnp.float32,
                precision=lax.Precision.HIGHEST) + b2_ref[...]

    o_ref[...] = jax.nn.sigmoid(y[:, :OUT])             # compact (Bt, 3) store


def _pad_params(w1, b1, w2, b2):
    """Zero-pad weights/biases to the kernel's lane-friendly layouts."""
    w1p = jnp.zeros((IN, HID_PAD), jnp.float32).at[:, :HID].set(w1)
    b1p = jnp.zeros((1, HID_PAD), jnp.float32).at[:, :HID].set(b1.reshape(1, HID))
    w2p = jnp.zeros((HID_PAD, OUT_PAD), jnp.float32).at[:HID, :OUT].set(w2)
    b2p = jnp.zeros((1, OUT_PAD), jnp.float32).at[:, :OUT].set(b2.reshape(1, OUT))
    return w1p, b1p, w2p, b2p


def _cdiv(a, b):
    return -(-a // b)


def _round_up(n, m):
    return _cdiv(n, m) * m


@partial(jax.jit, static_argnames=("block_b",))
def net_forward(x, w1, b1, w2, b2, block_b=4096):
    """Fused MLP forward; returns a flat (B*3,) vector like PyTorch's .view(-1)."""
    B = x.shape[0]
    x = x.astype(jnp.float32)
    w1p, b1p, w2p, b2p = _pad_params(w1, b1, w2, b2)
    out_shape = jax.ShapeDtypeStruct((B, OUT), jnp.float32)

    if B <= SINGLE_BLOCK_MAX:
        # Tiny batch: single invocation, no grid / pipelining machinery.
        out = pl.pallas_call(
            mlp_kernel,
            out_shape=out_shape,
        )(x, w1p, b1p, w2p, b2p)
    else:
        # Batch grid. Even number of blocks so the "parallel" axis splits
        # evenly across v7x's two TensorCores (no-op on v5e/v6e). No input
        # pad copy: Pallas handles the ragged last block (OOB input rows read
        # unspecified data; their output rows are discarded on writeback).
        n_blocks = _cdiv(B, block_b)
        if n_blocks % 2:
            n_blocks += 1
        bb = _round_up(_cdiv(B, n_blocks), 8)       # sublane-aligned rows/block
        grid = (_cdiv(B, bb),)
        out = pl.pallas_call(
            mlp_kernel,
            out_shape=out_shape,
            grid=grid,
            in_specs=[
                pl.BlockSpec((bb, IN), lambda i: (i, 0)),
                pl.BlockSpec((IN, HID_PAD), lambda i: (0, 0)),      # resident
                pl.BlockSpec((1, HID_PAD), lambda i: (0, 0)),       # resident
                pl.BlockSpec((HID_PAD, OUT_PAD), lambda i: (0, 0)),  # resident
                pl.BlockSpec((1, OUT_PAD), lambda i: (0, 0)),        # resident
            ],
            out_specs=pl.BlockSpec((bb, OUT), lambda i: (i, 0)),
            compiler_params=pltpu.CompilerParams(
                dimension_semantics=("parallel",),
                vmem_limit_bytes=32 * 1024 * 1024,
            ),
        )(x, w1p, b1p, w2p, b2p)

    return out.reshape(-1)  # contiguous (B, 3) -> free reshape, matches .view(-1)


def init_params(key):
    """Deterministic init mimicking PyTorch nn.Linear default:
    U(-1/sqrt(fan_in), 1/sqrt(fan_in)); weights stored as (in, out)."""
    k1, k2, k3, k4 = jax.random.split(key, 4)
    bound1 = 1.0 / jnp.sqrt(4.0)
    bound2 = 1.0 / jnp.sqrt(10.0)
    w1 = jax.random.uniform(k1, (IN, HID), jnp.float32, -bound1, bound1)
    b1 = jax.random.uniform(k2, (HID,), jnp.float32, -bound1, bound1)
    w2 = jax.random.uniform(k3, (HID, OUT), jnp.float32, -bound2, bound2)
    b2 = jax.random.uniform(k4, (OUT,), jnp.float32, -bound2, bound2)
    return w1, b1, w2, b2


if __name__ == "__main__":
    key = jax.random.PRNGKey(0)
    k_params, k_x1, k_x2 = jax.random.split(key, 3)
    w1, b1, w2, b2 = init_params(k_params)

    def ref_forward(x):
        h = jax.nn.sigmoid(
            jnp.dot(x, w1, precision=lax.Precision.HIGHEST) + b1)
        y = jax.nn.sigmoid(
            jnp.dot(h, w2, precision=lax.Precision.HIGHEST) + b2)
        return y.reshape(-1)

    # 1) Small Iris-style batch -> single-block (no-grid) path.
    x_small = jax.random.uniform(k_x1, (8, IN), jnp.float32, 0.0, 8.0)
    out_small = jax.block_until_ready(net_forward(x_small, w1, b1, w2, b2))
    assert out_small.shape == (8 * OUT,)
    assert jnp.allclose(out_small, ref_forward(x_small), atol=1e-5, rtol=1e-5)

    # 2) Larger ragged batch -> tiled 'parallel' 2-block grid path (no pad copy).
    x_big = jax.random.uniform(k_x2, (1337, IN), jnp.float32, 0.0, 8.0)
    out_big = jax.block_until_ready(net_forward(x_big, w1, b1, w2, b2))
    assert out_big.shape == (1337 * OUT,)
    assert jnp.allclose(out_big, ref_forward(x_big), atol=1e-5, rtol=1e-5)

    print("KERNEL_OK")
</pallas_src>

<mosaic_0001>
module attributes {stable_mosaic.version = 11 : i64} {
  func.func @mlp_kernel(%arg0: memref<8x4xf32, #tpu.memory_space<vmem>>, %arg1: memref<4x128xf32, #tpu.memory_space<vmem>>, %arg2: memref<1x128xf32, #tpu.memory_space<vmem>>, %arg3: memref<128x8xf32, #tpu.memory_space<vmem>>, %arg4: memref<1x8xf32, #tpu.memory_space<vmem>>, %arg5: memref<8x3xf32, #tpu.memory_space<vmem>>) attributes {dimension_semantics = [], scalar_prefetch = 0 : i64, scratch_operands = 0 : i64, tpu.core_type = #tpu.core_type<tc>} {
    %c0 = arith.constant 0 : index
    %c0_0 = arith.constant 0 : index
    %0 = vector.load %arg0[%c0, %c0_0] : memref<8x4xf32, #tpu.memory_space<vmem>>, vector<8x4xf32>
    %c0_1 = arith.constant 0 : index
    %c0_2 = arith.constant 0 : index
    %1 = vector.load %arg1[%c0_1, %c0_2] : memref<4x128xf32, #tpu.memory_space<vmem>>, vector<4x128xf32>
    %cst = arith.constant dense<0.000000e+00> : vector<8x128xf32>
    %2 = tpu.matmul %0, %1, %cst {dimension_numbers = #tpu.dot_dimension_numbers<[1], [0], [0], [1], [0, 0, 1, 1], [], []>, precision = #tpu.contract_precision<fp32>} : vector<8x4xf32>, vector<4x128xf32>, vector<8x128xf32> -> vector<8x128xf32>
    %c0_3 = arith.constant 0 : index
    %c0_4 = arith.constant 0 : index
    %3 = vector.load %arg2[%c0_3, %c0_4] : memref<1x128xf32, #tpu.memory_space<vmem>>, vector<1x128xf32>
    %4 = vector.broadcast %3 : vector<1x128xf32> to vector<8x128xf32>
    %5 = arith.addf %2, %4 : vector<8x128xf32>
    %6 = arith.negf %5 : vector<8x128xf32>
    %7 = math.exp %6 : vector<8x128xf32>
    %cst_5 = arith.constant 1.000000e+00 : f32
    %8 = vector.broadcast %cst_5 : f32 to vector<8x128xf32>
    %9 = arith.addf %8, %7 : vector<8x128xf32>
    %10 = arith.divf %8, %9 : vector<8x128xf32>
    %c0_6 = arith.constant 0 : index
    %c0_7 = arith.constant 0 : index
    %11 = vector.load %arg3[%c0_6, %c0_7] : memref<128x8xf32, #tpu.memory_space<vmem>>, vector<128x8xf32>
    %cst_8 = arith.constant dense<0.000000e+00> : vector<8x8xf32>
    %12 = tpu.matmul %10, %11, %cst_8 {dimension_numbers = #tpu.dot_dimension_numbers<[1], [0], [0], [1], [0, 0, 1, 1], [], []>, precision = #tpu.contract_precision<fp32>} : vector<8x128xf32>, vector<128x8xf32>, vector<8x8xf32> -> vector<8x8xf32>
    %c0_9 = arith.constant 0 : index
    %c0_10 = arith.constant 0 : index
    %13 = vector.load %arg4[%c0_9, %c0_10] : memref<1x8xf32, #tpu.memory_space<vmem>>, vector<1x8xf32>
    %14 = vector.broadcast %13 : vector<1x8xf32> to vector<8x8xf32>
    %15 = arith.addf %12, %14 : vector<8x8xf32>
    %16 = vector.extract_strided_slice %15 {offsets = [0, 0], sizes = [8, 3], strides = [1, 1]} : vector<8x8xf32> to vector<8x3xf32>
    %17 = arith.negf %16 : vector<8x3xf32>
    %18 = math.exp %17 : vector<8x3xf32>
    %cst_11 = arith.constant 1.000000e+00 : f32
    %19 = vector.broadcast %cst_11 : f32 to vector<8x3xf32>
    %20 = arith.addf %19, %18 : vector<8x3xf32>
    %21 = arith.divf %19, %20 : vector<8x3xf32>
    %c0_12 = arith.constant 0 : index
    %c0_13 = arith.constant 0 : index
    %22 = vector.load %arg5[%c0_12, %c0_13] : memref<8x3xf32, #tpu.memory_space<vmem>>, vector<8x3xf32>
    tpu.vector_store %arg5[%c0_12, %c0_13], %21 {strides = array<i32>} : memref<8x3xf32, #tpu.memory_space<vmem>>, vector<8x3xf32>,
    return
  }
}

</mosaic_0001>

<bundles_post_ra>
// kernel: net_forward.1
= control target key start
LH: loop header
LB: loop body
LE: loop exit
PB: predicated region body
PF: predicated region fallthrough
CT: control target
= control target key end

     0   :  { %vm33_vm0 = vcmask 1043456   ;;  %vm29_vm1 = vcmask 31744   ;;  %v1533_v0 = vmov 0.0   ;;  %vm1534_vm2 = vmmov 0   ;;  %s2005_s1 = inlined_call_operand.vmem [shape: f32[4,128], index: 1, kind: input, shape index: {}]   ;;  %s2006_s0 = inlined_call_operand.vmem [shape: f32[8,4], index: 0, kind: input, shape index: {}]   ;;  %s2007_s3 = inlined_call_operand.vmem [shape: f32[128,8], index: 3, kind: input, shape index: {}]   ;;  %s2008_s2 = inlined_call_operand.vmem [shape: f32[1,128], index: 2, kind: input, shape index: {}]   ;;  %s2009_s4 = inlined_call_operand.vmem [shape: f32[1,8], index: 4, kind: input, shape index: {}]   ;;  %s2010_s5 = inlined_call_operand.vmem [shape: f32[8,3], index: 5, kind: output, shape index: {}]  }
   0x1   :  { %1283 = vmatprep.subr.mxu0 %v1533_v0  ;;  %v21_v1 = vld [vmem:[%s2005_s1] sm:$0xf]  ;;  %1285 = vmatprep.mubr.msk.f32.mxu0 %vm1534_vm2, %v1533_v0  ;;  %v504_v15 = vld [vmem:[%s2007_s3 + $0x78] sm:$0xff]  ;;  %v503_v17 = vld [vmem:[%s2007_s3 + $0x70] sm:$0xff]  ;;  %vm1159_vm3 = vcmask 23552  }
   0x2   :  { %v20_v2 = vld [vmem:[%s2006_s0] sm:$0xff]  ;;  %v35_v3 = vsel %vm33_vm0, %v21_v1, 0  ;;  %1288 = vmatprep.subr.mxu1 %v1533_v0  ;;  %1290 = vmatprep.mubr.msk.f32.mxu1 %vm1534_vm2, %v1533_v0  ;;  %v1598_v16 = vand.u32 4294901760, %v504_v15  ;;  %v1606_v19 = vand.u32 4294901760, %v503_v17  ;;  %v502_v20 = vld [vmem:[%s2007_s3 + $0x68] sm:$0xff]  ;;  %v500_v29 = vld [vmem:[%s2007_s3 + $0x58] sm:$0xff] }
   0x3   :  { %v31_v4 = vsel %vm29_vm1, %v20_v2, 0  ;;  %v68_v5 = vand.u32 4294901760, %v35_v3  ;;  %v1617_v23 = vand.u32 4294901760, %v502_v20  ;;  %v501_v24 = vld [vmem:[%s2007_s3 + $0x60] sm:$0xff]  ;;  %v1646_v34 = vand.u32 4294901760, %v500_v29  ;;  %v499_v35 = vld [vmem:[%s2007_s3 + $0x50] sm:$0xff] }
   0x4   :  { %v103_v6 = vand.u32 4294901760, %v31_v4  ;;  %v1604_v18 = vsub.f32 %v504_v15, %v1598_v16  ;;  %v1615_v22 = vsub.f32 %v503_v17, %v1606_v19  ;;  %v1631_v28 = vand.u32 4294901760, %v501_v24  ;;  %v498_v41 = vld [vmem:[%s2007_s3 + $0x48] sm:$0xff]  ;;  %v497_v47 = vld [vmem:[%s2007_s3 + $0x40] sm:$0xff]  ;;  %v496_v53 = vld [vmem:[%s2007_s3 + $0x38] sm:$0xff] }
   0x5   :  { %1284 = vmatpush3.msra.mxu0 %v68_v5  ;;  %v145_v8 = vsub.f32 %v35_v3, %v68_v5  ;;  %v1629_v27 = vsub.f32 %v502_v20, %v1617_v23  ;;  %v1656_v39 = vand.u32 4294901760, %v499_v35  ;;  %v1660_v40 = vsub.f32 %v500_v29, %v1646_v34  ;;  %v495_v59 = vld [vmem:[%s2007_s3 + $0x30] sm:$0xff]  ;;  %v494_v2 = vld [vmem:[%s2007_s3 + $0x28] sm:$0xff] }
   0x6   :  { %v104_v7 = vsub.f32 %v31_v4, %v103_v6  ;;  %1293 = vmatprep.subr.mxu0 %v1533_v0  ;;  %v606_v21 = vand.u32 4294901760, %v1604_v18  ;;  %v613_v26 = vand.u32 4294901760, %v1615_v22  ;;  %v1643_v33 = vsub.f32 %v501_v24, %v1631_v28  ;;  %v491_v29 = vld [vmem:[%s2007_s3 + $0x10] sm:$0xff] }
   0x7   :  { %v146_v10 = vand.u32 4294901760, %v145_v8  ;;  %v620_v32 = vand.u32 4294901760, %v1629_v27  ;;  %v1670_v44 = vsub.f32 %v499_v35, %v1656_v39  ;;  %v1672_v45 = vand.u32 4294901760, %v498_v41 }
   0x8   :  { %v105_v9 = vand.u32 4294901760, %v104_v7  ;;  %v607_v25 = vsub.f32 %v1604_v18, %v606_v21  ;;  %v614_v31 = vsub.f32 %v1615_v22, %v613_v26  ;;  %v627_v38 = vand.u32 4294901760, %v1643_v33 }
   0x9   :  { %v147_v12 = vsub.f32 %v145_v8, %v146_v10  ;;  %v621_v37 = vsub.f32 %v1629_v27, %v620_v32  ;;  %v634_v46 = vand.u32 4294901760, %v1660_v40  ;;  %v641_v49 = vand.u32 4294901760, %v1670_v44 }
   0xa   :  { %v106_v11 = vsub.f32 %v104_v7, %v105_v9  ;;  %v608_v30 = vand.u32 4294901760, %v607_v25  ;;  %v615_v36 = vand.u32 4294901760, %v614_v31  ;;  %v628_v43 = vsub.f32 %v1643_v33, %v627_v38 }
   0xb   :  { %v148_v14 = vand.u32 4294901760, %v147_v12  ;;  %v622_v42 = vand.u32 4294901760, %v621_v37  ;;  %v1683_v50 = vsub.f32 %v498_v41, %v1672_v45  ;;  %v1685_v51 = vand.u32 4294901760, %v497_v47  ;;  %v490_v37 = vld [vmem:[%s2007_s3 + $0x8] sm:$0xff]  ;;  %v489_v41 = vld [vmem:[%s2007_s3] sm:$0xff] }
   0xc   :  { %v107_v13 = vand.u32 4294901760, %v106_v11  ;;  %v629_v48 = vand.u32 4294901760, %v628_v43  ;;  %v635_v52 = vsub.f32 %v1660_v40, %v634_v46  ;;  %v642_v54 = vsub.f32 %v1670_v44, %v641_v49 }
   0xd   :  { %1289 = vmatpush3.msra.mxu1 %v148_v14  ;;  %v648_v55 = vand.u32 4294901760, %v1683_v50  ;;  %v1701_v56 = vsub.f32 %v497_v47, %v1685_v51  ;;  %v1703_v57 = vand.u32 4294901760, %v496_v53  ;;  %v1719_v1 = vand.u32 4294901760, %v495_v59  ;;  %v492_v14 = vld [vmem:[%s2007_s3 + $0x18] sm:$0xff] }
   0xe   :  { %1286 = vmatmul.mubr.f32.vlgmr.msra.gmra.mxu0 %v107_v13  ;;  %1291 = vmatmul.mubr.f32.vlgmr.msra.gmra.mxu1 %v103_v6  ;;  %v636_v58 = vand.u32 4294901760, %v635_v52  ;;  %v643_v60 = vand.u32 4294901760, %v642_v54  ;;  %v1760_v24 = vand.u32 4294901760, %v492_v14  ;;  %v1787_v43 = vand.u32 4294901760, %v490_v37 }
   0xf   :  { %1294 = vmatpush3.msra.mxu0 %v145_v8  ;;  %1298 = vmatprep.subr.mxu1 %v1533_v0  ;;  %v649_v61 = vsub.f32 %v1683_v50, %v648_v55  ;;  %v655_v62 = vand.u32 4294901760, %v1701_v56  ;;  %v1716_v63 = vsub.f32 %v496_v53, %v1703_v57  ;;  %v493_v8 = vld [vmem:[%s2007_s3 + $0x20] sm:$0xff]  ;;  %v1789_v47 = vand.u32 4294901760, %v489_v41 }
  0x10   :  { %1295 = vmatprep.mubr.msk.f32.mxu0 %vm1534_vm2, %v1533_v0  ;;  %1299 = vmatpush3.msra.mxu1 %v68_v5  ;;  %v1747_v12 = vand.u32 4294901760, %v493_v8  ;;  %v1776_v35 = vsub.f32 %v492_v14, %v1760_v24 }
  0x11   :  { %1303 = vmatprep.subr.mxu0 %v1533_v0  ;;  %1300 = vmatprep.mubr.msk.f32.mxu1 %vm1534_vm2, %v1533_v0  ;;  %v650_v3 = vand.u32 4294901760, %v649_v61  ;;  %v656_v4 = vsub.f32 %v1701_v56, %v655_v62 }
  0x12   :  { %1296 = vmatmul.mubr.f32.vlgmr.msra.gmra.mxu0 %v104_v7  ;;  %1301 = vmatmul.mubr.f32.vlgmr.msra.gmra.mxu1 %v105_v9  ;;  %v1734_v7 = vsub.f32 %v495_v59, %v1719_v1  ;;  %v1758_v20 = vsub.f32 %v493_v8, %v1747_v12  ;;  %v2014_v53 = vand.u32 4294901760, %v1776_v35  ;;  %v1805_v59 = vsub.f32 %v489_v41, %v1789_v47 }
  0x13   :  { %1304 = vmatpush3.msra.mxu0 %v146_v10  ;;  %1308 = vmatprep.subr.mxu1 %v1533_v0  ;;  %v657_v9 = vand.u32 4294901760, %v656_v4 }
  0x14   :  { %1305 = vmatprep.mubr.msk.f32.mxu0 %vm1534_vm2, %v1533_v0  ;;  %1309 = vmatpush3.msra.mxu1 %v68_v5  ;;  %v662_v5 = vand.u32 4294901760, %v1716_v63  ;;  %v669_v13 = vand.u32 4294901760, %v1734_v7  ;;  %v2015_v31 = vand.u32 4294901760, %v1758_v20  ;;  %v691_v61 = vsub.f32 %v1776_v35, %v2014_v53 }
  0x15   :  { %1310 = vmatprep.mubr.msk.f32.mxu1 %vm1534_vm2, %v1533_v0  ;;  %1348 = vmatprep.subr.mxu1 %v1533_v0  ;;  %v2011_v4 = vand.u32 4294901760, %v1805_v59 }
  0x16   :  { %1306 = vmatmul.mubr.f32.vlgmr.msra.gmra.mxu0 %v103_v6  ;;  %1311 = vmatmul.mubr.f32.vlgmr.msra.gmra.mxu1 %v103_v6  ;;  %v1730_v6 = vand.u32 4294901760, %v494_v2  ;;  %v663_v10 = vsub.f32 %v1716_v63, %v662_v5  ;;  %v670_v25 = vsub.f32 %v1734_v7, %v669_v13  ;;  %v684_v52 = vsub.f32 %v1758_v20, %v2015_v31 }
  0x17   :  { %1313 = vmatprep.subr.mxu0 %v1533_v0  ;;  %1380 = vmatprep.mubr.msk.f32.mxu1 %vm1534_vm2, %v1533_v0  ;;  %v692_v8 = vand.u32 4294901760, %v691_v61  ;;  %v712_v14 = vsub.f32 %v1805_v59, %v2011_v4 }
  0x18   :  { %1345 = vmatprep.mubr.msk.f32.mxu0 %vm1534_vm2, %v1533_v0  ;;  %1314 = vmatpush3.msra.mxu0 %v1598_v16  ;;  %v1745_v11 = vsub.f32 %v494_v2, %v1730_v6  ;;  %v664_v15 = vand.u32 4294901760, %v663_v10 }
  0x19   :  { %1315 = vmatprep.subr.mxu0 %v1533_v0  ;;  %1349 = vmatpush3.msra.mxu1 %v608_v30 }
  0x1a   :  { %1316 = vmatpush3.msra.mxu0 %v1606_v19  ;;  %1350 = vmatprep.subr.mxu1 %v1533_v0  ;;  %v2016_v17 = vand.u32 4294901760, %v1745_v11 }
  0x1b   :  { %1317 = vmatprep.subr.mxu0 %v1533_v0  ;;  %1351 = vmatpush3.msra.mxu1 %v615_v36  ;;  %v1778_v36 = vand.u32 4294901760, %v491_v29 }
  0x1c   :  { %1318 = vmatpush3.msra.mxu0 %v1617_v23  ;;  %1352 = vmatprep.subr.mxu1 %v1533_v0  ;;  %v677_v30 = vsub.f32 %v1745_v11, %v2016_v17 }
  0x1d   :  { %1319 = vmatprep.subr.mxu0 %v1533_v0  ;;  %1353 = vmatpush3.msra.mxu1 %v622_v42  ;;  %v671_v42 = vand.u32 4294901760, %v670_v25  ;;  %v1798_v54 = vsub.f32 %v491_v29, %v1778_v36  ;;  %v713_v29 = vand.u32 4294901760, %v712_v14 }
  0x1e   :  { %1320 = vmatpush3.msra.mxu0 %v1631_v28  ;;  %1354 = vmatprep.subr.mxu1 %v1533_v0 }
  0x1f   :  { %1321 = vmatprep.subr.mxu0 %v1533_v0  ;;  %1355 = vmatpush3.msra.mxu1 %v629_v48  ;;  %v678_v48 = vand.u32 4294901760, %v677_v30  ;;  %v2013_v2 = vand.u32 4294901760, %v1798_v54  ;;  %v1165_v30 = vld [vmem:[%s2008_s2] ss:$0 sm:$0xff] }
  0x20   :  { %1322 = vmatpush3.msra.mxu0 %v1646_v34  ;;  %1356 = vmatprep.subr.mxu1 %v1533_v0 }
  0x21   :  { %1323 = vmatprep.subr.mxu0 %v1533_v0  ;;  %1357 = vmatpush3.msra.mxu1 %v636_v58  ;;  %v1802_v58 = vsub.f32 %v490_v37, %v1787_v43 }
  0x22   :  { %1324 = vmatpush3.msra.mxu0 %v1656_v39  ;;  %1358 = vmatprep.subr.mxu1 %v1533_v0 }
  0x23   :  { %1325 = vmatprep.subr.mxu0 %v1533_v0  ;;  %1359 = vmatpush3.msra.mxu1 %v643_v60  ;;  %v685_v60 = vand.u32 4294901760, %v684_v52 }
  0x24   :  { %1326 = vmatpush3.msra.mxu0 %v1672_v45  ;;  %1360 = vmatprep.subr.mxu1 %v1533_v0 }
  0x25   :  { %1327 = vmatprep.subr.mxu0 %v1533_v0  ;;  %1361 = vmatpush3.msra.mxu1 %v650_v3  ;;  %v2012_v3 = vand.u32 4294901760, %v1802_v58 }
  0x26   :  { %1328 = vmatpush3.msra.mxu0 %v1685_v51  ;;  %1362 = vmatprep.subr.mxu1 %v1533_v0 }
  0x27   :  { %1329 = vmatprep.subr.mxu0 %v1533_v0  ;;  %1363 = vmatpush3.msra.mxu1 %v657_v9  ;;  %v698_v9 = vsub.f32 %v1798_v54, %v2013_v2  ;;  %v705_v10 = vsub.f32 %v1802_v58, %v2012_v3 }
  0x28   :  { %1330 = vmatpush3.msra.mxu0 %v1703_v57  ;;  %1364 = vmatprep.subr.mxu1 %v1533_v0 }
  0x29   :  { %1331 = vmatprep.subr.mxu0 %v1533_v0  ;;  %1365 = vmatpush3.msra.mxu1 %v664_v15  ;;  %v699_v15 = vand.u32 4294901760, %v698_v9  ;;  %v706_v25 = vand.u32 4294901760, %v705_v10 }
  0x2a   :  { %1332 = vmatpush3.msra.mxu0 %v1719_v1  ;;  %1366 = vmatprep.subr.mxu1 %v1533_v0 }
  0x2b   :  { %1333 = vmatprep.subr.mxu0 %v1533_v0  ;;  %1367 = vmatpush3.msra.mxu1 %v671_v42 }
  0x2c   :  { %1334 = vmatpush3.msra.mxu0 %v1730_v6  ;;  %1368 = vmatprep.subr.mxu1 %v1533_v0 }
  0x2d   :  { %1335 = vmatprep.subr.mxu0 %v1533_v0  ;;  %1369 = vmatpush3.msra.mxu1 %v678_v48 }
  0x2e   :  { %1336 = vmatpush3.msra.mxu0 %v1747_v12  ;;  %1370 = vmatprep.subr.mxu1 %v1533_v0 }
  0x2f   :  { %1337 = vmatprep.subr.mxu0 %v1533_v0  ;;  %1371 = vmatpush3.msra.mxu1 %v685_v60 }
  0x30   :  { %1338 = vmatpush3.msra.mxu0 %v1760_v24  ;;  %1372 = vmatprep.subr.mxu1 %v1533_v0 }
  0x31   :  { %1339 = vmatprep.subr.mxu0 %v1533_v0  ;;  %1373 = vmatpush3.msra.mxu1 %v692_v8 }
  0x32   :  { %1340 = vmatpush3.msra.mxu0 %v1778_v36  ;;  %1374 = vmatprep.subr.mxu1 %v1533_v0 }
  0x33   :  { %1341 = vmatprep.subr.mxu0 %v1533_v0  ;;  %1375 = vmatpush3.msra.mxu1 %v699_v15 }
  0x34   :  { %1342 = vmatpush3.msra.mxu0 %v1787_v43  ;;  %1376 = vmatprep.subr.mxu1 %v1533_v0 }
  0x35   :  { %1343 = vmatprep.subr.mxu0 %v1533_v0  ;;  %1377 = vmatpush3.msra.mxu1 %v706_v25 }
  0x36   :  { %1344 = vmatpush3.msra.mxu0 %v1789_v47  ;;  %1378 = vmatprep.subr.mxu1 %v1533_v0 }
  0x37   :  { %1383 = vmatprep.subr.mxu0 %v1533_v0  ;;  %1379 = vmatpush3.msra.mxu1 %v713_v29 }
  0x38   :  { %1418 = vmatprep.subr.mxu1 %v1533_v0 }
  0xce   :  { %v109_v37 = vpop.f32.mrf.mxu0  ;;  %v185_v42 = vpop.f32.mrf.mxu1 }
  0xcf   :  { %v110_v41 = vadd.f32 %v1165_v30, %v109_v37 }
  0xd0   :  { %v1287_v48 = vpop.f32.mrf.mxu0  ;;  %v1292_v60 = vpop.f32.mrf.mxu1 }
  0xd1   :  { %v186_v52 = vadd.f32 %v185_v42, %v110_v41 }
  0xd2   :  { %v259_v61 = vpop.f32.mrf.mxu0  ;;  %v333_v9 = vpop.f32.mrf.mxu1 }
  0xd3   :  { %v260_v8 = vadd.f32 %v259_v61, %v186_v52 }
  0xd4   :  { %v1297_v10 = vpop.f32.mrf.mxu0  ;;  %v1302_v15 = vpop.f32.mrf.mxu1 }
  0xd5   :  { %v334_v14 = vadd.f32 %v333_v9, %v260_v8 }
  0xd6   :  { %v407_v25 = vpop.f32.mrf.mxu0  ;;  %v479_v4 = vpop.f32.mrf.mxu1 }
  0xd7   :  { %v408_v29 = vadd.f32 %v407_v25, %v334_v14 }
  0xd8   :  { %v1307_v3 = vpop.f32.mrf.mxu0  ;;  %v1312_v53 = vpop.f32.mrf.mxu1 }
  0xd9   :  { %v480_v2 = vadd.f32 %v479_v4, %v408_v29 }
  0xdb   :  { %v1166_v31 = vmul.f32 -1.442695, %v480_v2 }
  0xdd   :  { %1525 = vpow2.f32 %v1166_v31 }
  0xea   :  { %v1526_v17 = vpop.eup %1525 }
  0xeb   :  { %v486_v30 = vadd.f32 1.0, %v1526_v17 }
  0xed   :  { %1527 = vrcp.f32 %v486_v30 }
  0xfa   :  { %v1528_v37 = vpop.eup %1527 }
  0xfb   :  { %v1838_v41 = vand.u32 4294901760, %v1528_v37 }
  0xfd   :  { %1381 = vmatmul.mubr.f32.vlgmr.msra.gmra.mxu1 %v1838_v41  ;;  %v1842_v42 = vsub.f32 %v1528_v37, %v1838_v41 }
  0xfe   :  { %1419 = vmatpush3.msra.mxu1 %v1598_v16  ;;  %1450 = vmatprep.mubr.msk.f32.mxu1 %vm1534_vm2, %v1533_v0 }
  0xff   :  { %1420 = vmatprep.subr.mxu1 %v1533_v0  ;;  %v595_v31 = vand.u32 4294901760, %v1842_v42 }
 0x100   :  { %1421 = vmatpush3.msra.mxu1 %v1606_v19 }
 0x101   :  { %1422 = vmatprep.subr.mxu1 %v1533_v0  ;;  %v596_v17 = vsub.f32 %v1842_v42, %v595_v31 }
 0x102   :  { %1423 = vmatpush3.msra.mxu1 %v1617_v23 }
 0x103   :  { %1424 = vmatprep.subr.mxu1 %v1533_v0  ;;  %v597_v53 = vand.u32 4294901760, %v596_v17 }
 0x104   :  { %1425 = vmatpush3.msra.mxu1 %v1631_v28 }
 0x105   :  { %1426 = vmatprep.subr.mxu1 %v1533_v0  ;;  %1346 = vmatmul.mubr.f32.vlgmr.msra.gmra.mxu0 %v597_v53 }
 0x106   :  { %1384 = vmatpush3.msra.mxu0 %v1604_v18  ;;  %1427 = vmatpush3.msra.mxu1 %v1646_v34  ;;  %v2018_v18 = vand.u32 4294901760, %v1758_v20 }
 0x107   :  { %1385 = vmatprep.subr.mxu0 %v1533_v0  ;;  %1428 = vmatprep.subr.mxu1 %v1533_v0 }
 0x108   :  { %1386 = vmatpush3.msra.mxu0 %v1615_v22  ;;  %1429 = vmatpush3.msra.mxu1 %v1656_v39  ;;  %v2021_v22 = vand.u32 4294901760, %v1802_v58 }
 0x109   :  { %1387 = vmatprep.subr.mxu0 %v1533_v0  ;;  %1430 = vmatprep.subr.mxu1 %v1533_v0 }
 0x10a   :  { %1388 = vmatpush3.msra.mxu0 %v1629_v27  ;;  %1431 = vmatpush3.msra.mxu1 %v1672_v45 }
 0x10b   :  { %1389 = vmatprep.subr.mxu0 %v1533_v0  ;;  %1432 = vmatprep.subr.mxu1 %v1533_v0 }
 0x10c   :  { %1390 = vmatpush3.msra.mxu0 %v1643_v33  ;;  %1433 = vmatpush3.msra.mxu1 %v1685_v51 }
 0x10d   :  { %1391 = vmatprep.subr.mxu0 %v1533_v0  ;;  %1434 = vmatprep.subr.mxu1 %v1533_v0 }
 0x10e   :  { %1392 = vmatpush3.msra.mxu0 %v1660_v40  ;;  %1435 = vmatpush3.msra.mxu1 %v1703_v57  ;;  %v1167_v40 = vld [vmem:[%s2009_s4] ss:$0 sm:$0xff] }
 0x10f   :  { %1393 = vmatprep.subr.mxu0 %v1533_v0  ;;  %1436 = vmatprep.subr.mxu1 %v1533_v0 }
 0x110   :  { %1394 = vmatpush3.msra.mxu0 %v1670_v44  ;;  %1437 = vmatpush3.msra.mxu1 %v1719_v1 }
 0x111   :  { %1395 = vmatprep.subr.mxu0 %v1533_v0  ;;  %1438 = vmatprep.subr.mxu1 %v1533_v0 }
 0x112   :  { %1396 = vmatpush3.msra.mxu0 %v1683_v50  ;;  %1439 = vmatpush3.msra.mxu1 %v1730_v6 }
 0x113   :  { %1397 = vmatprep.subr.mxu0 %v1533_v0  ;;  %1440 = vmatprep.subr.mxu1 %v1533_v0 }
 0x114   :  { %1398 = vmatpush3.msra.mxu0 %v1701_v56  ;;  %1441 = vmatpush3.msra.mxu1 %v1747_v12 }
 0x115   :  { %1399 = vmatprep.subr.mxu0 %v1533_v0  ;;  %1442 = vmatprep.subr.mxu1 %v1533_v0 }
 0x116   :  { %1400 = vmatpush3.msra.mxu0 %v1716_v63  ;;  %1443 = vmatpush3.msra.mxu1 %v1760_v24 }
 0x117   :  { %1401 = vmatprep.subr.mxu0 %v1533_v0  ;;  %1444 = vmatprep.subr.mxu1 %v1533_v0 }
 0x118   :  { %1402 = vmatpush3.msra.mxu0 %v1734_v7  ;;  %1445 = vmatpush3.msra.mxu1 %v1778_v36 }
 0x119   :  { %1403 = vmatprep.subr.mxu0 %v1533_v0  ;;  %1446 = vmatprep.subr.mxu1 %v1533_v0 }
 0x11a   :  { %1404 = vmatpush3.msra.mxu0 %v1745_v11  ;;  %1447 = vmatpush3.msra.mxu1 %v1787_v43 }
 0x11b   :  { %1405 = vmatprep.subr.mxu0 %v1533_v0  ;;  %1448 = vmatprep.subr.mxu1 %v1533_v0 }
 0x11c   :  { %1406 = vmatpush3.msra.mxu0 %v1758_v20  ;;  %1449 = vmatpush3.msra.mxu1 %v1789_v47 }
 0x11d   :  { %1407 = vmatprep.subr.mxu0 %v1533_v0  ;;  %1451 = vmatmul.mubr.f32.vlgmr.msra.gmra.mxu1 %v595_v31 }
 0x11e   :  { %1488 = vmatprep.subr.mxu1 %v1533_v0  ;;  %1408 = vmatpush3.msra.mxu0 %v1776_v35 }
 0x11f   :  { %1489 = vmatpush3.msra.mxu1 %v1598_v16  ;;  %1409 = vmatprep.subr.mxu0 %v1533_v0  ;;  %v2017_v16 = vand.u32 4294901760, %v1745_v11 }
 0x120   :  { %1490 = vmatprep.subr.mxu1 %v1533_v0  ;;  %1410 = vmatpush3.msra.mxu0 %v1798_v54 }
 0x121   :  { %1491 = vmatpush3.msra.mxu1 %v1606_v19  ;;  %1411 = vmatprep.subr.mxu0 %v1533_v0  ;;  %v2019_v19 = vand.u32 4294901760, %v1776_v35 }
 0x122   :  { %1492 = vmatprep.subr.mxu1 %v1533_v0  ;;  %1412 = vmatpush3.msra.mxu0 %v1802_v58 }
 0x123   :  { %1493 = vmatpush3.msra.mxu1 %v1617_v23  ;;  %1413 = vmatprep.subr.mxu0 %v1533_v0  ;;  %v2022_v23 = vand.u32 4294901760, %v1805_v59 }
 0x124   :  { %1494 = vmatprep.subr.mxu1 %v1533_v0  ;;  %1414 = vmatpush3.msra.mxu0 %v1805_v59 }
 0x125   :  { %1415 = vmatprep.mubr.msk.f32.mxu0 %vm1534_vm2, %v1533_v0  ;;  %1495 = vmatpush3.msra.mxu1 %v1631_v28 }
 0x126   :  { %1416 = vmatmul.mubr.f32.vlgmr.msra.gmra.mxu0 %v1842_v42  ;;  %1453 = vmatprep.subr.mxu0 %v1533_v0 }
 0x127   :  { %1496 = vmatprep.subr.mxu1 %v1533_v0  ;;  %1454 = vmatpush3.msra.mxu0 %v606_v21  ;;  %v2020_v21 = vand.u32 4294901760, %v1798_v54 }
 0x128   :  { %1497 = vmatpush3.msra.mxu1 %v1646_v34  ;;  %1455 = vmatprep.subr.mxu0 %v1533_v0 }
 0x129   :  { %1498 = vmatprep.subr.mxu1 %v1533_v0  ;;  %1456 = vmatpush3.msra.mxu0 %v613_v26 }
 0x12a   :  { %1499 = vmatpush3.msra.mxu1 %v1656_v39  ;;  %1457 = vmatprep.subr.mxu0 %v1533_v0 }
 0x12b   :  { %1500 = vmatprep.subr.mxu1 %v1533_v0  ;;  %1458 = vmatpush3.msra.mxu0 %v620_v32 }
 0x12c   :  { %1501 = vmatpush3.msra.mxu1 %v1672_v45  ;;  %1459 = vmatprep.subr.mxu0 %v1533_v0 }
 0x12d   :  { %1502 = vmatprep.subr.mxu1 %v1533_v0  ;;  %1460 = vmatpush3.msra.mxu0 %v627_v38 }
 0x12e   :  { %1503 = vmatpush3.msra.mxu1 %v1685_v51  ;;  %1461 = vmatprep.subr.mxu0 %v1533_v0 }
 0x12f   :  { %1504 = vmatprep.subr.mxu1 %v1533_v0  ;;  %1462 = vmatpush3.msra.mxu0 %v634_v46 }
 0x130   :  { %1505 = vmatpush3.msra.mxu1 %v1703_v57  ;;  %1463 = vmatprep.subr.mxu0 %v1533_v0 }
 0x131   :  { %1506 = vmatprep.subr.mxu1 %v1533_v0  ;;  %1464 = vmatpush3.msra.mxu0 %v641_v49 }
 0x132   :  { %1507 = vmatpush3.msra.mxu1 %v1719_v1  ;;  %1465 = vmatprep.subr.mxu0 %v1533_v0 }
 0x133   :  { %1508 = vmatprep.subr.mxu1 %v1533_v0  ;;  %1466 = vmatpush3.msra.mxu0 %v648_v55 }
 0x134   :  { %1509 = vmatpush3.msra.mxu1 %v1730_v6  ;;  %1467 = vmatprep.subr.mxu0 %v1533_v0 }
 0x135   :  { %1510 = vmatprep.subr.mxu1 %v1533_v0  ;;  %1468 = vmatpush3.msra.mxu0 %v655_v62 }
 0x136   :  { %1511 = vmatpush3.msra.mxu1 %v1747_v12  ;;  %1469 = vmatprep.subr.mxu0 %v1533_v0 }
 0x137   :  { %1512 = vmatprep.subr.mxu1 %v1533_v0  ;;  %1470 = vmatpush3.msra.mxu0 %v662_v5 }
 0x138   :  { %1513 = vmatpush3.msra.mxu1 %v1760_v24  ;;  %1471 = vmatprep.subr.mxu0 %v1533_v0 }
 0x139   :  { %1514 = vmatprep.subr.mxu1 %v1533_v0  ;;  %1472 = vmatpush3.msra.mxu0 %v669_v13 }
 0x13a   :  { %1515 = vmatpush3.msra.mxu1 %v1778_v36  ;;  %1473 = vmatprep.subr.mxu0 %v1533_v0 }
 0x13b   :  { %1516 = vmatprep.subr.mxu1 %v1533_v0  ;;  %1474 = vmatpush3.msra.mxu0 %v2017_v16 }
 0x13c   :  { %1517 = vmatpush3.msra.mxu1 %v1787_v43  ;;  %1475 = vmatprep.subr.mxu0 %v1533_v0 }
 0x13d   :  { %1518 = vmatprep.subr.mxu1 %v1533_v0  ;;  %1476 = vmatpush3.msra.mxu0 %v2018_v18 }
 0x13e   :  { %1519 = vmatpush3.msra.mxu1 %v1789_v47  ;;  %1520 = vmatprep.mubr.msk.f32.mxu1 %vm1534_vm2, %v1533_v0 }
 0x13f   :  { %1477 = vmatprep.subr.mxu0 %v1533_v0  ;;  %1521 = vmatmul.mubr.f32.vlgmr.msra.gmra.mxu1 %v1838_v41 }
 0x140   :  { %1478 = vmatpush3.msra.mxu0 %v2019_v19  ;;  %1485 = vmatprep.mubr.msk.f32.mxu0 %vm1534_vm2, %v1533_v0 }
 0x141   :  { %1479 = vmatprep.subr.mxu0 %v1533_v0 }
 0x142   :  { %1480 = vmatpush3.msra.mxu0 %v2020_v21 }
 0x143   :  { %1481 = vmatprep.subr.mxu0 %v1533_v0 }
 0x144   :  { %1482 = vmatpush3.msra.mxu0 %v2021_v22 }
 0x145   :  { %1483 = vmatprep.subr.mxu0 %v1533_v0 }
 0x146   :  { %1484 = vmatpush3.msra.mxu0 %v2022_v23 }
 0x147   :  { %1486 = vmatmul.mubr.f32.vlgmr.msra.gmra.mxu0 %v1838_v41 }
 0x1bd   :  { %v750_v26 = vpop.f32.mrf.mxu1 }
 0x1bf   :  { %v1382_v27 = vpop.f32.mrf.mxu1 }
 0x1c5   :  { %v599_v28 = vpop.f32.mrf.mxu0 }
 0x1c6   :  { %v600_v44 = vadd.f32 %v1167_v40, %v599_v28 }
 0x1c7   :  { %v1347_v32 = vpop.f32.mrf.mxu0 }
 0x1c8   :  { %v751_v0 = vadd.f32 %v750_v26, %v600_v44 }
 0x1dd   :  { %v943_v33 = vpop.f32.mrf.mxu1 }
 0x1df   :  { %v1452_v34 = vpop.f32.mrf.mxu1 }
 0x1e6   :  { %v854_v38 = vpop.f32.mrf.mxu0 }
 0x1e7   :  { %v855_v49 = vadd.f32 %v854_v38, %v751_v0 }
 0x1e8   :  { %v1417_v39 = vpop.f32.mrf.mxu0 }
 0x1e9   :  { %v944_v50 = vadd.f32 %v943_v33, %v855_v49 }
 0x1ff   :  { %v1149_v45 = vpop.f32.mrf.mxu1 }
 0x201   :  { %v1522_v46 = vpop.f32.mrf.mxu1 }
 0x207   :  { %v1062_v51 = vpop.f32.mrf.mxu0 }
 0x208   :  { %v1063_v55 = vadd.f32 %v1062_v51, %v944_v50 }
 0x209   :  { %v1487_v56 = vpop.f32.mrf.mxu0 }
 0x20a   :  { %v1150_v57 = vadd.f32 %v1149_v45, %v1063_v55 }
 0x20c   :  { %v1168_v62 = vmul.f32 -1.442695, %v1150_v57 }
 0x20e   :  { %1529 = vpow2.f32 %v1168_v62 }
 0x21b   :  { %v1530_v63 = vpop.eup %1529 }
 0x21c   :  { %v1156_v1 = vadd.f32 1.0, %v1530_v63 }
 0x21e   :  { %1531 = vrcp.f32 %v1156_v1 }
 0x22b   :  { %v1532_v5 = vpop.eup %1531 }
 0x22c   :  { %1160 = vst.msk [vmem:[%s2010_s5] sm:$0xff] %vm1159_vm3, %v1532_v5 }

</bundles_post_ra>
